<compile_context>
chip_gen: v7x
topology: tpu7x:2x2x1
jax: 0.10.0
libtpu: 0.0.40
codegen_flags: <defaults>
</compile_context>

<pallas_src>
import jax
import jax.numpy as jnp
from jax.experimental import pallas as pl
from jax.experimental.pallas import tpu as pltpu


# ----------------------------------------------------------------------------
# Small helpers
# ----------------------------------------------------------------------------
def _round_up(a, b):
    return (a + b - 1) // b * b


def _pad2(a, rows, cols):
    pr, pc = rows - a.shape[0], cols - a.shape[1]
    if pr or pc:
        a = jnp.pad(a, ((0, pr), (0, pc)))
    return a


def _default_tiles():
    """Generation-aware (tm, tn, tk) targets.

    v6e / v7x : 1024 x 512 x 512  (256-wide MXU, high HBM BW -> need intensity)
    v5e/older : 512 x 256 x 512   (128-wide MXU, ~240 flop/byte roofline)
    """
    try:
        kind = jax.devices()[0].device_kind.lower()
    except Exception:  # pragma: no cover
        kind = ""
    if any(t in kind for t in ("v2", "v3", "v4", "v5")):
        return 512, 256, 512
    return 1024, 512, 512


def _pick_tm(M, sub, tm_target):
    """Pick a row tile: as large as possible, shrink if padding waste > ~12.5%."""
    Mp = _round_up(max(M, 1), sub)
    tm = min(tm_target, Mp)
    while tm > sub and _round_up(Mp, tm) - Mp > Mp // 8:
        tm = max(_round_up(tm // 2, sub), sub)
    return tm, _round_up(Mp, tm)


def _plan_geometry(K, N, rank, dtype, tm_target, tn_target, tk_target):
    itemsize = jnp.dtype(dtype).itemsize
    sub = {4: 8, 2: 16, 1: 32}.get(itemsize, 8)   # sublane packing multiple

    # N: lane-dense; when N is big enough, pad up to a multiple of the N-tile
    # rather than shrinking the tile to 128 (perf review).
    Np = _round_up(N, 128)
    if Np >= tn_target:
        tn = tn_target
        Np = _round_up(Np, tn)
    else:
        tn = Np

    # K: single full-K reduction step when it fits, else tile at tk_target.
    if K <= tk_target:
        tk, Kp = K, K
    else:
        tk = tk_target
        Kp = _round_up(K, tk)

    Rp = _round_up(rank, 8)
    return dict(sub=sub, tn=tn, Np=Np, tk=tk, Kp=Kp, Rp=Rp, tm_target=tm_target)


# ----------------------------------------------------------------------------
# Pallas kernel:  y = x @ WbT + (x @ downT) @ upT + bias
# ----------------------------------------------------------------------------
def _lora_linear_kernel(x_ref, wbt_ref, downt_ref, upt_ref, bias_ref,
                        o_ref, acc_ref, t_ref):
    j = pl.program_id(1)
    k = pl.program_id(2)

    x = x_ref[...]
    base_part = jnp.dot(x, wbt_ref[...], preferred_element_type=jnp.float32)

    @pl.when(k == 0)
    def _init():
        # First K step: assign (no zero-fill) and fold the bias broadcast in.
        acc_ref[...] = base_part + bias_ref[...]

    @pl.when(k > 0)
    def _accum():
        acc_ref[...] += base_part

    # LoRA down projection: computed only once per row-panel (j == 0); the
    # (tm, Rp) f32 scratch stays resident across the whole j sweep
    # (j is marked "arbitrary" so this is safe on megacore / multi-TC chips).
    @pl.when(j == 0)
    def _down():
        d_part = jnp.dot(x, downt_ref[...], preferred_element_type=jnp.float32)

        @pl.when(k == 0)
        def _():
            t_ref[...] = d_part

        @pl.when(k > 0)
        def _():
            t_ref[...] += d_part

    @pl.when(k == pl.num_programs(2) - 1)
    def _finalize():
        # Up projection in the weights' native dtype (bf16 fast path when
        # weights are bf16; no-op astype for f32 weights), f32 accumulation.
        resid = jnp.dot(t_ref[...].astype(upt_ref.dtype), upt_ref[...],
                        preferred_element_type=jnp.float32)
        o_ref[...] = (acc_ref[...] + resid).astype(o_ref.dtype)


def _lora_linear_pallas(xp, wbT, downT, upT, bias2, *, tm, tn, tk, out_dtype):
    Mp, Kp = xp.shape
    Np = wbT.shape[1]
    Rp = downT.shape[1]
    itemsize = jnp.dtype(out_dtype).itemsize

    grid = (Mp // tm, Np // tn, Kp // tk)

    # Double-buffered inputs + double-buffered output + f32 scratch; cap at
    # 40 MiB so the same config leaves headroom on v7x (64 MiB physical VMEM).
    wdt = jnp.dtype(wbT.dtype).itemsize
    xdt = jnp.dtype(xp.dtype).itemsize
    vmem_est = (2 * (tm * tk * xdt + (tk * tn + tk * Rp + Rp * tn) * wdt + tn * 4)
                + 2 * tm * tn * itemsize
                + (tm * tn + tm * Rp) * 4)
    vmem_limit = int(min(max(2 * vmem_est, 32 << 20), 40 << 20))

    return pl.pallas_call(
        _lora_linear_kernel,
        out_shape=jax.ShapeDtypeStruct((Mp, Np), out_dtype),
        grid_spec=pltpu.PrefetchScalarGridSpec(
            num_scalar_prefetch=0,
            grid=grid,
            in_specs=[
                pl.BlockSpec((tm, tk), lambda i, j, k: (i, k)),   # x
                pl.BlockSpec((tk, tn), lambda i, j, k: (k, j)),   # Wb.T
                pl.BlockSpec((tk, Rp), lambda i, j, k: (k, 0)),   # down.T (used at j==0)
                pl.BlockSpec((Rp, tn), lambda i, j, k: (0, j)),   # up.T
                pl.BlockSpec((1, tn), lambda i, j, k: (0, j)),    # bias (f32)
            ],
            out_specs=pl.BlockSpec((tm, tn), lambda i, j, k: (i, j)),
            scratch_shapes=[
                pltpu.VMEM((tm, tn), jnp.float32),   # base-matmul accumulator
                pltpu.VMEM((tm, Rp), jnp.float32),   # LoRA down accumulator (persists over j)
            ],
        ),
        compiler_params=pltpu.CompilerParams(
            # j carries the down-projection guard -> must be sequential;
            # i carries the megacore / multi-TensorCore parallelism.
            dimension_semantics=("parallel", "arbitrary", "arbitrary"),
            vmem_limit_bytes=vmem_limit,
        ),
    )(xp, wbT, downT, upT, bias2)


# ----------------------------------------------------------------------------
# LoraLinear module equivalent (weight combination + caching in plain JAX)
# ----------------------------------------------------------------------------
class LoraLinearPallas:
    """JAX/Pallas equivalent of common.loras.LoraLinear.

    num_loras == 1  -> get_weights_none (identity / concat of one tensor).
    num_loras > 1   -> 'one' / 'two' scale combination; 'global' needs an
                       externally supplied global_w['global_w'].
    Transposed + padded operands are prepared once and cached.
    """

    def __init__(self, base_weight, base_bias=None, rank=32, num_loras=1,
                 weight_mode="one", lora_down=None, lora_up=None,
                 scale_one=None, scale_two=None, global_w=None):
        self.base_weight = base_weight            # (out, in) — torch Linear layout
        self.base_bias = base_bias                # (out,) or None
        self.num_loras = num_loras
        self.weight_mode = weight_mode
        self.global_w = global_w or {}
        out_f, in_f = base_weight.shape
        self.out_features, self.in_features = out_f, in_f
        self.rank = rank

        if lora_down is None:
            lora_down = [jax.random.normal(jax.random.PRNGKey(i),
                                           (rank, in_f), jnp.float32) / rank
                         for i in range(num_loras)]
        if lora_up is None:
            lora_up = [jnp.zeros((out_f, rank), jnp.float32)
                       for _ in range(num_loras)]
        self.lora_down = list(lora_down)
        self.lora_up = list(lora_up)

        self.each_scale_one = None
        self.each_scale_two = None
        if num_loras > 1 and weight_mode in ("one", "two"):
            self.each_scale_one = (scale_one if scale_one is not None
                                   else jnp.ones((num_loras,), jnp.float32) / num_loras)
        if num_loras > 1 and weight_mode == "two":
            self.each_scale_two = (scale_two if scale_two is not None
                                   else jnp.ones((num_loras,), jnp.float32) / num_loras)

        # ---- geometry + cached (transposed, padded) operands --------------
        tm_t, tn_t, tk_t = _default_tiles()
        self._geom = _plan_geometry(in_f, out_f, rank, base_weight.dtype,
                                    tm_t, tn_t, tk_t)
        g = self._geom
        self._wbT = _pad2(jnp.transpose(base_weight), g["Kp"], g["Np"])
        if base_bias is None:
            self._bias2 = jnp.zeros((1, g["Np"]), jnp.float32)
        else:
            self._bias2 = _pad2(base_bias.reshape(1, out_f).astype(jnp.float32),
                                1, g["Np"])
        self.refresh_lora()   # caches combined downT / upT (call again if scales change)

    # get_weights_{none,one,two,global} equivalent --------------------------
    def _combine(self):
        if self.num_loras == 1:
            # get_weights_none: cat of a single tensor == the tensor itself
            return self.lora_down[0], self.lora_up[0]
        d_stack = jnp.stack(self.lora_down)       # (L, R, in)
        u_stack = jnp.stack(self.lora_up)         # (L, out, R)
        if self.weight_mode == "one":
            s = self.each_scale_one
            down = (d_stack * s[:, None, None]).sum(0)
            up = (u_stack * s[:, None, None]).sum(0)
        elif self.weight_mode == "two":
            down = (d_stack * self.each_scale_one[:, None, None]).sum(0)
            up = (u_stack * self.each_scale_two[:, None, None]).sum(0)
        else:
            # TODO(synk): 'global' weight mode needs an externally injected global_w['global_w'].
            gw = self.global_w["global_w"]
            down = (d_stack * gw[:, None, None]).sum(0)
            up = (u_stack * gw[:, None, None]).sum(0)
        return down, up

    def refresh_lora(self):
        """Recombine + re-cache the transposed/padded LoRA operands."""
        down, up = self._combine()                # (R, in), (out, R)
        g = self._geom
        self._downT = _pad2(jnp.transpose(down), g["Kp"], g["Rp"])
        self._upT = _pad2(jnp.transpose(up), g["Rp"], g["Np"])
        return down, up

    def __call__(self, x):
        g = self._geom
        lead = x.shape[:-1]
        x2d = x.reshape(-1, self.in_features)
        M = x2d.shape[0]

        tm, Mp = _pick_tm(M, g["sub"], g["tm_target"])
        xp = _pad2(x2d, Mp, g["Kp"])

        y2d = _lora_linear_pallas(
            xp, self._wbT, self._downT, self._upT, self._bias2,
            tm=tm, tn=g["tn"], tk=g["tk"], out_dtype=x.dtype)

        return y2d[:M, :self.out_features].reshape(*lead, self.out_features)


# ----------------------------------------------------------------------------
# Pure-JAX reference (torch semantics) for verification
# ----------------------------------------------------------------------------
def _ref_lora_linear(x, wb, bb, down, up):
    hp = jax.lax.Precision.HIGHEST
    orig = jnp.matmul(x, wb.T, precision=hp)
    if bb is not None:
        orig = orig + bb
    resid = jnp.matmul(jnp.matmul(x, down.T, precision=hp), up.T, precision=hp)
    return orig + resid


if __name__ == "__main__":
    key = jax.random.PRNGKey(0)
    B, S, IN, OUT, RANK = 2, 8, 256, 256, 32
    num_loras = 2
    ks = jax.random.split(key, 8)

    x = jax.random.normal(ks[0], (B, S, IN), jnp.float32)
    base_w = jax.random.normal(ks[1], (OUT, IN), jnp.float32) / (IN ** 0.5)
    base_b = jax.random.normal(ks[2], (OUT,), jnp.float32) * 0.1
    # module zero-inits lora_up; use small random values to exercise the path
    lora_down = [jax.random.normal(ks[3 + i], (RANK, IN), jnp.float32) / RANK
                 for i in range(num_loras)]
    lora_up = [jax.random.normal(ks[5 + i], (OUT, RANK), jnp.float32) * 0.05
               for i in range(num_loras)]
    scale_one = jax.random.uniform(ks[7], (num_loras,), jnp.float32)

    # num_loras > 1, weight_mode='one'
    mod = LoraLinearPallas(base_w, base_b, rank=RANK, num_loras=num_loras,
                           weight_mode="one", lora_down=lora_down,
                           lora_up=lora_up, scale_one=scale_one)
    y = jax.block_until_ready(mod(x))
    down_c, up_c = mod._combine()
    y_ref = _ref_lora_linear(x, base_w, base_b, down_c, up_c)
    assert y.shape == (B, S, OUT)
    err = float(jnp.max(jnp.abs(y - y_ref)))
    assert jnp.allclose(y, y_ref, atol=2e-2, rtol=2e-2), err

    # num_loras == 1 ('none' combination), no bias
    mod1 = LoraLinearPallas(base_w, None, rank=RANK, num_loras=1,
                            lora_down=lora_down[:1], lora_up=lora_up[:1])
    y1 = jax.block_until_ready(mod1(x))
    y1_ref = _ref_lora_linear(x, base_w, None, lora_down[0], lora_up[0])
    err1 = float(jnp.max(jnp.abs(y1 - y1_ref)))
    assert jnp.allclose(y1, y1_ref, atol=2e-2, rtol=2e-2), err1

    print("KERNEL_OK")
</pallas_src>

<mosaic_0001>
module attributes {stable_mosaic.version = 11 : i64} {
  func.func @_lora_linear_kernel(%arg0: i32, %arg1: i32, %arg2: i32, %arg3: memref<16x256xf32, #tpu.memory_space<vmem>>, %arg4: memref<256x256xf32, #tpu.memory_space<vmem>>, %arg5: memref<256x32xf32, #tpu.memory_space<vmem>>, %arg6: memref<32x256xf32, #tpu.memory_space<vmem>>, %arg7: memref<1x256xf32, #tpu.memory_space<vmem>>, %arg8: memref<16x256xf32, #tpu.memory_space<vmem>>, %arg9: memref<16x256xf32, #tpu.memory_space<vmem>>, %arg10: memref<16x32xf32, #tpu.memory_space<vmem>>) attributes {dimension_semantics = [#tpu.dimension_semantics<parallel>, #tpu.dimension_semantics<arbitrary>, #tpu.dimension_semantics<arbitrary>], iteration_bounds = array<i64: 1, 1, 1>, scalar_prefetch = 0 : i64, scratch_operands = 2 : i64, tpu.core_type = #tpu.core_type<tc>, window_params = [{transform_indices = @transform_0, window_bounds = array<i64: 16, 256>}, {transform_indices = @transform_1, window_bounds = array<i64: 256, 256>}, {transform_indices = @transform_2, window_bounds = array<i64: 256, 32>}, {transform_indices = @transform_3, window_bounds = array<i64: 32, 256>}, {transform_indices = @transform_4, window_bounds = array<i64: 1, 256>}, {transform_indices = @transform_5, window_bounds = array<i64: 16, 256>}]} {
    %c0 = arith.constant 0 : index
    %c0_0 = arith.constant 0 : index
    %0 = vector.load %arg3[%c0, %c0_0] : memref<16x256xf32, #tpu.memory_space<vmem>>, vector<16x256xf32>
    %c0_1 = arith.constant 0 : index
    %c0_2 = arith.constant 0 : index
    %1 = vector.load %arg4[%c0_1, %c0_2] : memref<256x256xf32, #tpu.memory_space<vmem>>, vector<256x256xf32>
    %cst = arith.constant dense<0.000000e+00> : vector<16x256xf32>
    %2 = tpu.matmul %0, %1, %cst {dimension_numbers = #tpu.dot_dimension_numbers<[1], [0], [0], [1], [0, 0, 1, 1], [], []>} : vector<16x256xf32>, vector<256x256xf32>, vector<16x256xf32> -> vector<16x256xf32>
    %c0_i32 = arith.constant 0 : i32
    %3 = arith.cmpi eq, %arg2, %c0_i32 : i32
    %4 = arith.extui %3 : i1 to i32
    %c0_i32_3 = arith.constant 0 : i32
    %5 = arith.cmpi ne, %4, %c0_i32_3 : i32
    scf.if %5 {
      %c0_10 = arith.constant 0 : index
      %c0_11 = arith.constant 0 : index
      %15 = vector.load %arg7[%c0_10, %c0_11] : memref<1x256xf32, #tpu.memory_space<vmem>>, vector<1x256xf32>
      %16 = vector.broadcast %15 : vector<1x256xf32> to vector<16x256xf32>
      %17 = arith.addf %2, %16 : vector<16x256xf32>
      %c0_12 = arith.constant 0 : index
      %c0_13 = arith.constant 0 : index
      %18 = vector.load %arg9[%c0_12, %c0_13] : memref<16x256xf32, #tpu.memory_space<vmem>>, vector<16x256xf32>
      tpu.vector_store %arg9[%c0_12, %c0_13], %17 {strides = array<i32>} : memref<16x256xf32, #tpu.memory_space<vmem>>, vector<16x256xf32>,
    } else {
    }
    %c0_i32_4 = arith.constant 0 : i32
    %6 = arith.cmpi sgt, %arg2, %c0_i32_4 : i32
    %7 = arith.extui %6 : i1 to i32
    %c0_i32_5 = arith.constant 0 : i32
    %8 = arith.cmpi ne, %7, %c0_i32_5 : i32
    scf.if %8 {
      %c0_10 = arith.constant 0 : index
      %c0_11 = arith.constant 0 : index
      %15 = vector.load %arg9[%c0_10, %c0_11] : memref<16x256xf32, #tpu.memory_space<vmem>>, vector<16x256xf32>
      %16 = arith.addf %15, %2 : vector<16x256xf32>
      %c0_12 = arith.constant 0 : index
      %c0_13 = arith.constant 0 : index
      %17 = vector.load %arg9[%c0_12, %c0_13] : memref<16x256xf32, #tpu.memory_space<vmem>>, vector<16x256xf32>
      tpu.vector_store %arg9[%c0_12, %c0_13], %16 {strides = array<i32>} : memref<16x256xf32, #tpu.memory_space<vmem>>, vector<16x256xf32>,
    } else {
    }
    %c0_i32_6 = arith.constant 0 : i32
    %9 = arith.cmpi eq, %arg1, %c0_i32_6 : i32
    %10 = arith.extui %9 : i1 to i32
    %c0_i32_7 = arith.constant 0 : i32
    %11 = arith.cmpi ne, %10, %c0_i32_7 : i32
    scf.if %11 {
      %c0_10 = arith.constant 0 : index
      %c0_11 = arith.constant 0 : index
      %15 = vector.load %arg5[%c0_10, %c0_11] : memref<256x32xf32, #tpu.memory_space<vmem>>, vector<256x32xf32>
      %cst_12 = arith.constant dense<0.000000e+00> : vector<16x32xf32>
      %16 = tpu.matmul %0, %15, %cst_12 {dimension_numbers = #tpu.dot_dimension_numbers<[1], [0], [0], [1], [0, 0, 1, 1], [], []>} : vector<16x256xf32>, vector<256x32xf32>, vector<16x32xf32> -> vector<16x32xf32>
      %c0_i32_13 = arith.constant 0 : i32
      %17 = arith.cmpi eq, %arg2, %c0_i32_13 : i32
      %18 = arith.extui %17 : i1 to i32
      %c0_i32_14 = arith.constant 0 : i32
      %19 = arith.cmpi ne, %18, %c0_i32_14 : i32
      scf.if %19 {
        %c0_17 = arith.constant 0 : index
        %c0_18 = arith.constant 0 : index
        %23 = vector.load %arg10[%c0_17, %c0_18] : memref<16x32xf32, #tpu.memory_space<vmem>>, vector<16x32xf32>
        tpu.vector_store %arg10[%c0_17, %c0_18], %16 {strides = array<i32>} : memref<16x32xf32, #tpu.memory_space<vmem>>, vector<16x32xf32>,
      } else {
      }
      %c0_i32_15 = arith.constant 0 : i32
      %20 = arith.cmpi sgt, %arg2, %c0_i32_15 : i32
      %21 = arith.extui %20 : i1 to i32
      %c0_i32_16 = arith.constant 0 : i32
      %22 = arith.cmpi ne, %21, %c0_i32_16 : i32
      scf.if %22 {
        %c0_17 = arith.constant 0 : index
        %c0_18 = arith.constant 0 : index
        %23 = vector.load %arg10[%c0_17, %c0_18] : memref<16x32xf32, #tpu.memory_space<vmem>>, vector<16x32xf32>
        %24 = arith.addf %23, %16 : vector<16x32xf32>
        %c0_19 = arith.constant 0 : index
        %c0_20 = arith.constant 0 : index
        %25 = vector.load %arg10[%c0_19, %c0_20] : memref<16x32xf32, #tpu.memory_space<vmem>>, vector<16x32xf32>
        tpu.vector_store %arg10[%c0_19, %c0_20], %24 {strides = array<i32>} : memref<16x32xf32, #tpu.memory_space<vmem>>, vector<16x32xf32>,
      } else {
      }
    } else {
    }
    %c0_i32_8 = arith.constant 0 : i32
    %12 = arith.cmpi eq, %arg2, %c0_i32_8 : i32
    %13 = arith.extui %12 : i1 to i32
    %c0_i32_9 = arith.constant 0 : i32
    %14 = arith.cmpi ne, %13, %c0_i32_9 : i32
    scf.if %14 {
      %c0_10 = arith.constant 0 : index
      %c0_11 = arith.constant 0 : index
      %15 = vector.load %arg10[%c0_10, %c0_11] : memref<16x32xf32, #tpu.memory_space<vmem>>, vector<16x32xf32>
      %c0_12 = arith.constant 0 : index
      %c0_13 = arith.constant 0 : index
      %16 = vector.load %arg6[%c0_12, %c0_13] : memref<32x256xf32, #tpu.memory_space<vmem>>, vector<32x256xf32>
      %cst_14 = arith.constant dense<0.000000e+00> : vector<16x256xf32>
      %17 = tpu.matmul %15, %16, %cst_14 {dimension_numbers = #tpu.dot_dimension_numbers<[1], [0], [0], [1], [0, 0, 1, 1], [], []>} : vector<16x32xf32>, vector<32x256xf32>, vector<16x256xf32> -> vector<16x256xf32>
      %c0_15 = arith.constant 0 : index
      %c0_16 = arith.constant 0 : index
      %18 = vector.load %arg9[%c0_15, %c0_16] : memref<16x256xf32, #tpu.memory_space<vmem>>, vector<16x256xf32>
      %19 = arith.addf %18, %17 : vector<16x256xf32>
      %c0_17 = arith.constant 0 : index
      %c0_18 = arith.constant 0 : index
      %20 = vector.load %arg8[%c0_17, %c0_18] : memref<16x256xf32, #tpu.memory_space<vmem>>, vector<16x256xf32>
      tpu.vector_store %arg8[%c0_17, %c0_18], %19 {strides = array<i32>} : memref<16x256xf32, #tpu.memory_space<vmem>>, vector<16x256xf32>,
    } else {
    }
    return
  }
  func.func @transform_0(%arg0: i32, %arg1: i32, %arg2: i32) -> (i32, i32) {
    %c0_i32 = arith.constant 0 : i32
    return %arg0, %arg2 : i32, i32
  }
  func.func @transform_1(%arg0: i32, %arg1: i32, %arg2: i32) -> (i32, i32) {
    %c0_i32 = arith.constant 0 : i32
    return %arg2, %arg1 : i32, i32
  }
  func.func @transform_2(%arg0: i32, %arg1: i32, %arg2: i32) -> (i32, i32) {
    %c0_i32 = arith.constant 0 : i32
    %c0_i32_0 = arith.constant 0 : i32
    return %arg2, %c0_i32 : i32, i32
  }
  func.func @transform_3(%arg0: i32, %arg1: i32, %arg2: i32) -> (i32, i32) {
    %c0_i32 = arith.constant 0 : i32
    %c0_i32_0 = arith.constant 0 : i32
    return %c0_i32, %arg1 : i32, i32
  }
  func.func @transform_4(%arg0: i32, %arg1: i32, %arg2: i32) -> (i32, i32) {
    %c0_i32 = arith.constant 0 : i32
    %c0_i32_0 = arith.constant 0 : i32
    return %c0_i32, %arg1 : i32, i32
  }
  func.func @transform_5(%arg0: i32, %arg1: i32, %arg2: i32) -> (i32, i32) {
    %c0_i32 = arith.constant 0 : i32
    return %arg0, %arg1 : i32, i32
  }
}

</mosaic_0001>

<bundles_post_ra>
// kernel: tpu_custom_call.1
= control target key start
LH: loop header
LB: loop body
LE: loop exit
PB: predicated region body
PF: predicated region fallthrough
CT: control target
= control target key end

     0   :  { %10 = vsyncpa [#allocation5], 0  ;;  %s890_s0 = inlined_call_operand.vmem [shape: f32[16,256], index: 0, kind: input, shape index: {}]   ;;  %s891_s1 = inlined_call_operand.hbm [shape: f32[256,256], index: 1, kind: input, shape index: {}]   ;;  %s892_s2 = inlined_call_operand.vmem [shape: f32[256,32], index: 2, kind: input, shape index: {}]   ;;  %s893_s3 = inlined_call_operand.vmem [shape: f32[32,256], index: 3, kind: input, shape index: {}]   ;;  %s894_s4 = inlined_call_operand.vmem [shape: f32[1,256], index: 4, kind: input, shape index: {}]   ;;  %s895_s5 = inlined_call_operand.hbm [shape: f32[16,256], index: 5, kind: output, shape index: {}]  }
   0x1   :  { %11 = vsyncpa [#allocation6], 0  ;;  %s678_s18 = smov [#allocation4]   ;;  %s630_s22 = scalar_lea.hbm %s891_s1, 8192 }
   0x2   :  { %s19_s19 = sshll.u32 %s678_s18, 4  ;;  %p631_p0 = scmp.ne.s32.totalorder %s891_s1, %s630_s22  ;;  %s20_s19 = int_to_ptr.vmem [resolvable:$true] %s19_s19 }
   0x3   :  { %p634_p1 = scmp.lt.u32.totalorder %s630_s22, %s891_s1 }
   0x5   :  { %p636_p2 = pnand %p634_p1, %p631_p0 }
   0x7   :  { %639 = shalt.err (!%p636_p2)
}
   0x8   :  { %s640_s27 = scalar_lea.vmem %s20_s19, 8192  ;;  %p645_p4 = scmp.lt.s32.totalorder %s20_s19, %s20_s19 }
   0x9   :  { %p641_p3 = scmp.ne.s32.totalorder %s20_s19, %s640_s27  ;;  %p646_p5 = scmp.lt.s32.totalorder %s640_s27, %s640_s27 }
   0xb   :  { %p647_p6 = por %p646_p5, %p645_p4 }
   0xd   :  { %p648_p7 = pnand %p647_p6, %p641_p3 }
   0xf   :  { %651 = shalt.err (!%p648_p7)
}
  0x10   :  { %s679_s28 = smov 256   ;;  %s680_s29 = smov 16  }
  0x11   :  { %25 = dma.hbm_to_vmem [thread:$0]  %s891_s1, 8192, %s20_s19, [#allocation5], %s679_s28, %s679_s28, %s680_s29  }
  0x12   :  { %674 = dma.done.wait [#allocation5], 8192  }
  0x13   :  { %675 = vsyncadd [#allocation5], 4294959104  ;;  %v240_v0 = vld [vmem:[%s892_s2 + $0x80] sm:$0xff]  ;;  %v241_v1 = vld [vmem:[%s892_s2 + $0x88] sm:$0xff]  ;;  %vm334_vm0 = vcmask 261120   ;;  %s682_s21 = smov [#allocation7]  }
  0x14   :  { %v224_v2 = vld [vmem:[%s892_s2] sm:$0xff]  ;;  %v577_v3 = vpack.c.bf16 %v241_v1, %v240_v0  ;;  %v225_v4 = vld [vmem:[%s892_s2 + $0x8] sm:$0xff]  ;;  %v242_v5 = vld [vmem:[%s892_s2 + $0x90] sm:$0xff]  ;;  %s461_s22 = sshll.u32 %s682_s21, 4  ;;  %s462_s22 = int_to_ptr.vmem [resolvable:$true] %s461_s22 }
  0x15   :  { %v243_v6 = vld [vmem:[%s892_s2 + $0x98] sm:$0xff]  ;;  %v579_v7 = vpack.c.bf16 %v225_v4, %v224_v2  ;;  %v226_v9 = vld [vmem:[%s892_s2 + $0x10] sm:$0xff]  ;;  %v244_v11 = vld [vmem:[%s892_s2 + $0xa0] sm:$0xff]  ;;  %p657_p9 = scmp.lt.s32.totalorder %s462_s22, %s462_s22 }
  0x16   :  { %v581_v8 = vpack.c.bf16 %v243_v6, %v242_v5  ;;  %v227_v10 = vld [vmem:[%s892_s2 + $0x18] sm:$0xff]  ;;  %578 = vmatprep.subr.bf16.mxu1 %v577_v3  ;;  %v245_v12 = vld [vmem:[%s892_s2 + $0xa8] sm:$0xff]  ;;  %v228_v15 = vld [vmem:[%s892_s2 + $0x20] sm:$0xff] }
  0x17   :  { %580 = vmatpush3.bf16.msra.mxu1 %v579_v7  ;;  %v583_v13 = vpack.c.bf16 %v227_v10, %v226_v9  ;;  %v585_v14 = vpack.c.bf16 %v245_v12, %v244_v11  ;;  %v229_v16 = vld [vmem:[%s892_s2 + $0x28] sm:$0xff]  ;;  %v246_v17 = vld [vmem:[%s892_s2 + $0xb0] sm:$0xff]  ;;  %v247_v18 = vld [vmem:[%s892_s2 + $0xb8] sm:$0xff] }
  0x18   :  { %582 = vmatprep.subr.bf16.mxu1 %v581_v8  ;;  %v587_v19 = vpack.c.bf16 %v229_v16, %v228_v15  ;;  %v589_v20 = vpack.c.bf16 %v247_v18, %v246_v17  ;;  %v230_v21 = vld [vmem:[%s892_s2 + $0x30] sm:$0xff]  ;;  %v231_v22 = vld [vmem:[%s892_s2 + $0x38] sm:$0xff]  ;;  %v248_v23 = vld [vmem:[%s892_s2 + $0xc0] sm:$0xff] }
  0x19   :  { %v249_v24 = vld [vmem:[%s892_s2 + $0xc8] sm:$0xff]  ;;  %v232_v26 = vld [vmem:[%s892_s2 + $0x40] sm:$0xff]  ;;  %v591_v28 = vpack.c.bf16 %v231_v22, %v230_v21  ;;  %v250_v29 = vld [vmem:[%s892_s2 + $0xd0] sm:$0xff] }
  0x1a   :  { %v36_v25 = vld [vmem:[%s890_s0 + $0x8] sm:$0xff]  ;;  %v251_v30 = vld [vmem:[%s892_s2 + $0xd8] sm:$0xff]  ;;  %v39_v33 = vld [vmem:[#allocation4] sm:$0xff]  ;;  %v593_v34 = vpack.c.bf16 %v249_v24, %v248_v23 }
  0x1b   :  { %584 = vmatpush3.bf16.msra.mxu1 %v583_v13  ;;  %v233_v27 = vld [vmem:[%s892_s2 + $0x48] sm:$0xff]  ;;  %320 = vmatprep.mubr.f32.mxu1 %v36_v25  ;;  %v40_v31 = vld [vmem:[#allocation4 + $0x8] sm:$0xff]  ;;  %v41_v36 = vld [vmem:[#allocation4 + $0x10] sm:$0xff]  ;;  %v597_v49 = vpack.c.bf16 %v251_v30, %v250_v29 }
  0x1c   :  { %586 = vmatprep.subr.bf16.mxu1 %v585_v14  ;;  %167 = vmatprep.mubr.f32.mxu0 %v36_v25  ;;  %v42_v32 = vld [vmem:[#allocation4 + $0x18] sm:$0xff]  ;;  %v44_v37 = vld [vmem:[#allocation4 + $0x28] sm:$0xff]  ;;  %v515_v39 = vpack.c.bf16 %v41_v36, %v39_v33  ;;  %v43_v41 = vld [vmem:[#allocation4 + $0x20] sm:$0xff]  ;;  %v595_v45 = vpack.c.bf16 %v233_v27, %v232_v26 }
  0x1d   :  { %v513_v35 = vpack.c.bf16 %v42_v32, %v40_v31  ;;  %v46_v38 = vld [vmem:[#allocation4 + $0x38] sm:$0xff]  ;;  %v45_v42 = vld [vmem:[#allocation4 + $0x30] sm:$0xff]  ;;  %v48_v43 = vld [vmem:[#allocation4 + $0x48] sm:$0xff] }
  0x1e   :  { %v517_v40 = vpack.c.bf16 %v46_v38, %v44_v37  ;;  %v50_v44 = vld [vmem:[#allocation4 + $0x58] sm:$0xff]  ;;  %v234_v46 = vld [vmem:[%s892_s2 + $0x50] sm:$0xff]  ;;  %v235_v47 = vld [vmem:[%s892_s2 + $0x58] sm:$0xff]  ;;  %v519_v48 = vpack.c.bf16 %v45_v42, %v43_v41 }
  0x1f   :  { %588 = vmatpush3.bf16.msra.mxu1 %v587_v19  ;;  %514 = vmatprep.subr.bf16.mxu0 %v513_v35  ;;  %v252_v50 = vld [vmem:[%s892_s2 + $0xe0] sm:$0xff]  ;;  %v521_v51 = vpack.c.bf16 %v50_v44, %v48_v43  ;;  %v47_v52 = vld [vmem:[#allocation4 + $0x40] sm:$0xff]  ;;  %v253_v54 = vld [vmem:[%s892_s2 + $0xe8] sm:$0xff]  ;;  %v599_v57 = vpack.c.bf16 %v235_v47, %v234_v46 }
  0x20   :  { %590 = vmatprep.subr.bf16.mxu1 %v589_v20  ;;  %516 = vmatpush1.bf16.msra.mxu0 %v515_v39  ;;  %v49_v53 = vld [vmem:[#allocation4 + $0x50] sm:$0xff]  ;;  %v52_v55 = vld [vmem:[#allocation4 + $0x68] sm:$0xff]  ;;  %v54_v56 = vld [vmem:[#allocation4 + $0x78] sm:$0xff]  ;;  %v601_v61 = vpack.c.bf16 %v253_v54, %v252_v50 }
  0x21   :  { %518 = vmatprep.subr.bf16.mxu0 %v517_v40  ;;  %v236_v58 = vld [vmem:[%s892_s2 + $0x60] sm:$0xff]  ;;  %v237_v59 = vld [vmem:[%s892_s2 + $0x68] sm:$0xff]  ;;  %v523_v60 = vpack.c.bf16 %v49_v53, %v47_v52  ;;  %v254_v62 = vld [vmem:[%s892_s2 + $0xf0] sm:$0xff]  ;;  %v525_v63 = vpack.c.bf16 %v54_v56, %v52_v55 }
  0x22   :  { %v51_v0 = vld [vmem:[#allocation4 + $0x60] sm:$0xff]  ;;  %v53_v1 = vld [vmem:[#allocation4 + $0x70] sm:$0xff]  ;;  %v255_v2 = vld [vmem:[%s892_s2 + $0xf8] sm:$0xff]  ;;  %v603_v5 = vpack.c.bf16 %v237_v59, %v236_v58 }
  0x23   :  { %592 = vmatpush3.bf16.msra.mxu1 %v591_v28  ;;  %v56_v3 = vld [vmem:[#allocation4 + $0x88] sm:$0xff]  ;;  %v58_v4 = vld [vmem:[#allocation4 + $0x98] sm:$0xff]  ;;  %v238_v6 = vld [vmem:[%s892_s2 + $0x70] sm:$0xff]  ;;  %v527_v7 = vpack.c.bf16 %v53_v1, %v51_v0  ;;  %v605_v8 = vpack.c.bf16 %v255_v2, %v254_v62 }
  0x24   :  { %594 = vmatprep.subr.bf16.mxu1 %v593_v34  ;;  %520 = vmatpush1.bf16.msra.mxu0 %v519_v48  ;;  %v239_v9 = vld [vmem:[%s892_s2 + $0x78] sm:$0xff]  ;;  %v529_v10 = vpack.c.bf16 %v58_v4, %v56_v3  ;;  %v55_v11 = vld [vmem:[#allocation4 + $0x80] sm:$0xff]  ;;  %v57_v12 = vld [vmem:[#allocation4 + $0x90] sm:$0xff] }
  0x25   :  { %522 = vmatprep.subr.bf16.mxu0 %v521_v51  ;;  %v60_v13 = vld [vmem:[#allocation4 + $0xa8] sm:$0xff]  ;;  %v62_v14 = vld [vmem:[#allocation4 + $0xb8] sm:$0xff]  ;;  %v607_v15 = vpack.c.bf16 %v239_v9, %v238_v6  ;;  %v531_v16 = vpack.c.bf16 %v57_v12, %v55_v11  ;;  %v59_v18 = vld [vmem:[#allocation4 + $0xa0] sm:$0xff] }
  0x26   :  { %v533_v17 = vpack.c.bf16 %v62_v14, %v60_v13  ;;  %v61_v19 = vld [vmem:[#allocation4 + $0xb0] sm:$0xff]  ;;  %v64_v20 = vld [vmem:[#allocation4 + $0xc8] sm:$0xff]  ;;  %v66_v21 = vld [vmem:[#allocation4 + $0xd8] sm:$0xff] }
  0x27   :  { %596 = vmatpush3.bf16.msra.mxu1 %v595_v45  ;;  %v830_v22 = vld [vmem:[%s890_s0] sm:$0xff]  ;;  %v535_v23 = vpack.c.bf16 %v61_v19, %v59_v18  ;;  %v835_v24 = vld [vmem:[%s890_s0 + $0x18] sm:$0xff]  ;;  %v537_v25 = vpack.c.bf16 %v66_v21, %v64_v20  ;;  %v63_v26 = vld [vmem:[#allocation4 + $0xc0] sm:$0xff] }
  0x28   :  { %598 = vmatprep.subr.bf16.mxu1 %v597_v49  ;;  %524 = vmatpush1.bf16.msra.mxu0 %v523_v60  ;;  %v65_v27 = vld [vmem:[#allocation4 + $0xd0] sm:$0xff]  ;;  %v68_v28 = vld [vmem:[#allocation4 + $0xe8] sm:$0xff]  ;;  %v70_v29 = vld [vmem:[#allocation4 + $0xf8] sm:$0xff] }
  0x29   :  { %526 = vmatprep.subr.bf16.mxu0 %v525_v63  ;;  %v842_v30 = vld [vmem:[%s890_s0 + $0x10] sm:$0xff]  ;;  %v539_v31 = vpack.c.bf16 %v65_v27, %v63_v26  ;;  %v541_v32 = vpack.c.bf16 %v70_v29, %v68_v28  ;;  %v69_v34 = vld [vmem:[#allocation4 + $0xf0] sm:$0xff]  ;;  %v72_v35 = vld [vmem:[#allocation4 + $0x108] sm:$0xff] }
  0x2a   :  { %v67_v33 = vld [vmem:[#allocation4 + $0xe0] sm:$0xff]  ;;  %v74_v36 = vld [vmem:[#allocation4 + $0x118] sm:$0xff]  ;;  %v73_v40 = vld [vmem:[#allocation4 + $0x110] sm:$0xff] }
  0x2b   :  { %600 = vmatpush3.bf16.msra.mxu1 %v599_v57  ;;  %v543_v37 = vpack.c.bf16 %v69_v34, %v67_v33  ;;  %v545_v38 = vpack.c.bf16 %v74_v36, %v72_v35  ;;  %v71_v39 = vld [vmem:[#allocation4 + $0x100] sm:$0xff]  ;;  %v76_v41 = vld [vmem:[#allocation4 + $0x128] sm:$0xff]  ;;  %v78_v42 = vld [vmem:[#allocation4 + $0x138] sm:$0xff]  ;;  %v681_v35 = vmov 0.0  }
  0x2c   :  { %602 = vmatprep.subr.bf16.mxu1 %v601_v61  ;;  %528 = vmatpush1.bf16.msra.mxu0 %v527_v7  ;;  %v547_v43 = vpack.c.bf16 %v73_v40, %v71_v39  ;;  %v549_v44 = vpack.c.bf16 %v78_v42, %v76_v41  ;;  %v75_v45 = vld [vmem:[#allocation4 + $0x120] sm:$0xff]  ;;  %v77_v46 = vld [vmem:[#allocation4 + $0x130] sm:$0xff]  ;;  %v80_v47 = vld [vmem:[#allocation4 + $0x148] sm:$0xff] }
  0x2d   :  { %530 = vmatprep.subr.bf16.mxu0 %v529_v10  ;;  %v82_v48 = vld [vmem:[#allocation4 + $0x158] sm:$0xff]  ;;  %v551_v49 = vpack.c.bf16 %v77_v46, %v75_v45  ;;  %v79_v51 = vld [vmem:[#allocation4 + $0x140] sm:$0xff]  ;;  %v81_v52 = vld [vmem:[#allocation4 + $0x150] sm:$0xff]  ;;  %v186_v46 = vlaneseq }
  0x2e   :  { %v553_v50 = vpack.c.bf16 %v82_v48, %v80_v47  ;;  %v84_v53 = vld [vmem:[#allocation4 + $0x168] sm:$0xff]  ;;  %v86_v54 = vld [vmem:[#allocation4 + $0x178] sm:$0xff]  ;;  %v555_v55 = vpack.c.bf16 %v81_v52, %v79_v51  ;;  %v83_v57 = vld [vmem:[#allocation4 + $0x160] sm:$0xff] }
  0x2f   :  { %604 = vmatpush3.bf16.msra.mxu1 %v603_v5  ;;  %v557_v56 = vpack.c.bf16 %v86_v54, %v84_v53  ;;  %v85_v58 = vld [vmem:[#allocation4 + $0x170] sm:$0xff]  ;;  %v88_v59 = vld [vmem:[#allocation4 + $0x188] sm:$0xff]  ;;  %v90_v60 = vld [vmem:[#allocation4 + $0x198] sm:$0xff] }
  0x30   :  { %606 = vmatprep.subr.bf16.mxu1 %v605_v8  ;;  %532 = vmatpush1.bf16.msra.mxu0 %v531_v16  ;;  %v559_v61 = vpack.c.bf16 %v85_v58, %v83_v57  ;;  %v561_v62 = vpack.c.bf16 %v90_v60, %v88_v59  ;;  %v87_v63 = vld [vmem:[#allocation4 + $0x180] sm:$0xff]  ;;  %v89_v0 = vld [vmem:[#allocation4 + $0x190] sm:$0xff]  ;;  %v92_v1 = vld [vmem:[#allocation4 + $0x1a8] sm:$0xff] }
  0x31   :  { %534 = vmatprep.subr.bf16.mxu0 %v533_v17  ;;  %v94_v2 = vld [vmem:[#allocation4 + $0x1b8] sm:$0xff]  ;;  %v563_v3 = vpack.c.bf16 %v89_v0, %v87_v63  ;;  %v91_v5 = vld [vmem:[#allocation4 + $0x1a0] sm:$0xff]  ;;  %v93_v6 = vld [vmem:[#allocation4 + $0x1b0] sm:$0xff] }
  0x32   :  { %v565_v4 = vpack.c.bf16 %v94_v2, %v92_v1  ;;  %v567_v7 = vpack.c.bf16 %v93_v6, %v91_v5  ;;  %v96_v8 = vld [vmem:[#allocation4 + $0x1c8] sm:$0xff]  ;;  %v98_v9 = vld [vmem:[#allocation4 + $0x1d8] sm:$0xff]  ;;  %v95_v11 = vld [vmem:[#allocation4 + $0x1c0] sm:$0xff] }
  0x33   :  { %608 = vmatpush3.bf16.msra.mxu1 %v607_v15  ;;  %v569_v10 = vpack.c.bf16 %v98_v9, %v96_v8  ;;  %v97_v12 = vld [vmem:[#allocation4 + $0x1d0] sm:$0xff]  ;;  %v353_v14 = vld [vmem:[%s893_s3 + $0x8] sm:$0xff]  ;;  %v355_v15 = vld [vmem:[%s893_s3 + $0x18] sm:$0xff] }
  0x34   :  { %536 = vmatpush1.bf16.msra.mxu0 %v535_v23  ;;  %v571_v13 = vpack.c.bf16 %v97_v12, %v95_v11  ;;  %v609_v16 = vpack.c.bf16 %v355_v15, %v353_v14  ;;  %v352_v17 = vld [vmem:[%s893_s3] sm:$0xff]  ;;  %v354_v18 = vld [vmem:[%s893_s3 + $0x10] sm:$0xff]  ;;  %v100_v19 = vld [vmem:[#allocation4 + $0x1e8] sm:$0xff] }
  0x35   :  { %538 = vmatprep.subr.bf16.mxu0 %v537_v25  ;;  %v611_v20 = vpack.c.bf16 %v354_v18, %v352_v17  ;;  %v102_v21 = vld [vmem:[#allocation4 + $0x1f8] sm:$0xff]  ;;  %v99_v23 = vld [vmem:[#allocation4 + $0x1e0] sm:$0xff]  ;;  %v101_v25 = vld [vmem:[#allocation4 + $0x1f0] sm:$0xff] }
  0x36   :  { %321 = vmatmul.mubr.f32.vlgmr.msra.gmra.mrb[0].mxu1 %v830_v22  ;;  %610 = vmatprep.subr.bf16.mxu1 %v609_v16  ;;  %v573_v26 = vpack.c.bf16 %v102_v21, %v100_v19  ;;  %v575_v27 = vpack.c.bf16 %v101_v25, %v99_v23  ;;  %v357_v28 = vld [vmem:[%s893_s3 + $0x28] sm:$0xff]  ;;  %v359_v29 = vld [vmem:[%s893_s3 + $0x38] sm:$0xff]  ;;  %v358_v33 = vld [vmem:[%s893_s3 + $0x30] sm:$0xff] }
  0x37   :  { %325 = vmatprep.mubr.f32.mxu1 %v835_v24  ;;  %612 = vmatpush1.bf16.msra.mxu1 %v611_v20  ;;  %v184_v48 = vld [vmem:[%s894_s4] sm:$0x3]  ;;  %s652_s4 = scalar_lea.vmem %s462_s22, 512 }
  0x38   :  { %540 = vmatpush1.bf16.msra.mxu0 %v539_v31  ;;  %v613_v31 = vpack.c.bf16 %v359_v29, %v357_v28  ;;  %p653_p8 = scmp.ne.s32.totalorder %s462_s22, %s652_s4  ;;  %p658_p10 = scmp.lt.s32.totalorder %s652_s4, %s652_s4 }
  0x39   :  { %542 = vmatprep.subr.bf16.mxu0 %v541_v32  ;;  %v356_v32 = vld [vmem:[%s893_s3 + $0x20] sm:$0xff] }
  0x3a   :  { %326 = vmatmul.mubr.f32.gmra.mrb[2].mxu1 %v842_v30  ;;  %v615_v34 = vpack.c.bf16 %v358_v33, %v356_v32  ;;  %614 = vmatprep.subr.bf16.mxu1 %v613_v31  ;;  %p659_p11 = por %p658_p10, %p657_p9 }
  0x3b   :  { %431 = vmatprep.mubr.f32.mxu1 %v681_v35 }
  0x3c   :  { %544 = vmatpush1.bf16.msra.mxu0 %v543_v37  ;;  %616 = vmatpush1.bf16.msra.mxu1 %v615_v34  ;;  %p660_p12 = pnand %p659_p11, %p653_p8 }
  0x3d   :  { %546 = vmatprep.subr.bf16.mxu0 %v545_v38 }
  0x40   :  { %548 = vmatpush1.bf16.msra.mxu0 %v547_v43 }
  0x41   :  { %550 = vmatprep.subr.bf16.mxu0 %v549_v44 }
  0x44   :  { %552 = vmatpush1.bf16.msra.mxu0 %v551_v49 }
  0x45   :  { %554 = vmatprep.subr.bf16.mxu0 %v553_v50 }
  0x48   :  { %556 = vmatpush1.bf16.msra.mxu0 %v555_v55 }
  0x49   :  { %558 = vmatprep.subr.bf16.mxu0 %v557_v56 }
  0x4c   :  { %560 = vmatpush1.bf16.msra.mxu0 %v559_v61 }
  0x4d   :  { %562 = vmatprep.subr.bf16.mxu0 %v561_v62 }
  0x50   :  { %564 = vmatpush1.bf16.msra.mxu0 %v563_v3 }
  0x51   :  { %566 = vmatprep.subr.bf16.mxu0 %v565_v4 }
  0x54   :  { %568 = vmatpush1.bf16.msra.mxu0 %v567_v7 }
  0x55   :  { %570 = vmatprep.subr.bf16.mxu0 %v569_v10 }
  0x58   :  { %572 = vmatpush1.bf16.msra.mxu0 %v571_v13 }
  0x59   :  { %574 = vmatprep.subr.bf16.mxu0 %v573_v26 }
  0x5c   :  { %576 = vmatpush1.bf16.msra.mxu0 %v575_v27 }
  0x5f   :  { %168 = vmatmul.mubr.f32.vlgmr.msra.gmra.mrb[0].mxu0 %v830_v22 }
  0x60   :  { %173 = vmatprep.mubr.f32.mxu0 %v835_v24 }
  0x63   :  { %174 = vmatmul.mubr.f32.gmra.mrb[2].mxu0 %v842_v30  ;;  %v187_v30 = vshrl.u32 %v186_v46, 7 }
  0x65   :  { %v188_v47 = vsub.s32 0, %v187_v30  ;;  %v192_v49 = vsub.s32 1, %v187_v30 }
  0x67   :  { %v189_v50 = vrot.slane %v184_v48, %v188_v47  ;;  %v193_v51 = vrot.slane %v184_v48, %v192_v49 }
 0x109   :  { %v507_v36 = vpop.f32.mrb[0].mxu1 }
 0x10a   :  { %v508_v37 = vpop.f32.mrb[1].mxu1 }
 0x10b   :  { %v509_v38 = vadd.f32 %v508_v37, %v507_v36 }
 0x10d   :  { %335 = vst.msk [vmem:[#allocation3] sm:$0xff] %vm334_vm0, %v509_v38  ;;  %v510_v39 = vpop.f32.mrb[2].mxu1 }
 0x10e   :  { %v511_v40 = vpop.f32.mrb[3].mxu1 }
 0x10f   :  { %v512_v41 = vadd.f32 %v511_v40, %v510_v39 }
 0x111   :  { %336 = vst.msk [vmem:[#allocation3 + $0x8] sm:$0xff] %vm334_vm0, %v512_v41 }
 0x114   :  { %v350_v42 = vld [vmem:[#allocation3] sm:$0xff] }
 0x115   :  { %473 = vmatmul.mubr.msk.f32.vlgmr.msra.gmra.mrb[4].mxu1 %vm334_vm0, %v350_v42 }
 0x116   :  { %437 = vmatprep.mubr.f32.mxu1 %v681_v35 }
 0x118   :  { %v351_v43 = vld [vmem:[#allocation3 + $0x8] sm:$0xff] }
 0x119   :  { %474 = vmatmul.mubr.msk.f32.gmra.mrb[6].mxu1 %vm334_vm0, %v351_v43 }
 0x132   :  { %v169_v44 = vpop.f32.mrb[0].mxu0 }
 0x133   :  { %v171_v22 = vpop.f32.mrb[1].mxu0  ;;  %v196_v52 = vadd.f32 %v189_v50, %v169_v44 }
 0x134   :  { %v197_v53 = vadd.f32 %v193_v51, %v171_v22 }
 0x136   :  { %v175_v45 = vpop.f32.mrb[2].mxu0 }
 0x137   :  { %v177_v24 = vpop.f32.mrb[3].mxu0  ;;  %v198_v56 = vadd.f32 %v189_v50, %v175_v45 }
 0x138   :  { %v199_v59 = vadd.f32 %v193_v51, %v177_v24 }
 0x1e8   :  { %v433_v54 = vpop.f32.mrb[4].mxu1 }
 0x1e9   :  { %v448_v55 = vadd.f32 %v433_v54, %v196_v52  ;;  %v435_v57 = vpop.f32.mrb[5].mxu1 }
 0x1ea   :  { %v449_v58 = vadd.f32 %v435_v57, %v197_v53 }
 0x1eb   :  { %452 = vst [vmem:[#allocation7] sm:$0xff] %v448_v55 }
 0x1ec   :  { %453 = vst [vmem:[#allocation7 + $0x8] sm:$0xff] %v449_v58  ;;  %v439_v60 = vpop.f32.mrb[6].mxu1 }
 0x1ed   :  { %v450_v61 = vadd.f32 %v439_v60, %v198_v56  ;;  %v441_v62 = vpop.f32.mrb[7].mxu1 }
 0x1ee   :  { %v451_v63 = vadd.f32 %v441_v62, %v199_v59 }
 0x1ef   :  { %454 = vst [vmem:[#allocation7 + $0x10] sm:$0xff] %v450_v61 }
 0x1f0   :  { %455 = vst [vmem:[#allocation7 + $0x18] sm:$0xff] %v451_v63 }
 0x1f1   :  { %663 = shalt.err (!%p660_p12)
}
 0x1f2   :  { %s664_s2 = scalar_lea.hbm %s895_s5, 512 }
 0x1f3   :  { %p665_p13 = scmp.ne.s32.totalorder %s895_s5, %s664_s2  ;;  %p668_p0 = scmp.lt.u32.totalorder %s664_s2, %s895_s5 }
 0x1f5   :  { %p670_p1 = pnand %p668_p0, %p665_p13 }
 0x1f7   :  { %673 = shalt.err (!%p670_p1)
}
 0x1f8   :  { %467 = dma.vmem_to_hbm [thread:$0]  %s462_s22, 512, %s895_s5, [#allocation6], %s679_s28, %s679_s28, %s680_s29  }
 0x1f9   :  { %676 = dma.done.wait [#allocation6], 512  }
 0x1fa   :  { %677 = vsyncadd [#allocation6], 4294966784 }
 0x1fb   :  { %471 = vsyncpa [#allocation5], 1 }
 0x1fc   :  { %472 = vsyncpa [#allocation6], 1 }

</bundles_post_ra>
